<compile_context>
chip_gen: v7x
topology: tpu7x:2x2x1
jax: 0.10.0
libtpu: 0.0.40
codegen_flags: <defaults>
</compile_context>

<pallas_src>
import math

import jax
import jax.numpy as jnp
from jax.experimental import pallas as pl
from jax.experimental.pallas import tpu as pltpu


LANE = 128                              # TPU lane width
MAX_LANE_MULT = 32                      # widest slab last dim = 32 * 128 = 4096
TARGET_TILE_BYTES = 4 * 1024 * 1024     # ~4 MiB per buffer (2 in + 2 out double-buffered
                                        #  = ~16 MiB, fits v7x's 64 MiB / raised scoped limit)
VMEM_LIMIT_BYTES = 32 * 1024 * 1024     # raise v5e's 16 MiB default; default elsewhere


def _copy_kernel(x_ref, o_ref):
    # Identity copy of the current (tile_rows, width) tile.
    o_ref[...] = x_ref[...]


def _resolve_shape(shape, numel):
    """Resolve a single -1 in `shape` (torch.view semantics)."""
    shape = list(shape)
    if shape.count(-1) > 1:
        raise ValueError("only one dimension can be inferred")
    if -1 in shape:
        known = 1
        for s in shape:
            if s != -1:
                known *= s
        idx = shape.index(-1)
        if known == 0 or numel % known != 0:
            raise ValueError(f"cannot view {numel} elements as {tuple(shape)}")
        shape[idx] = numel // known
    if math.prod(shape) != numel:
        raise ValueError(f"cannot view {numel} elements as {tuple(shape)}")
    return tuple(shape)


def _slab_geometry(numel, itemsize):
    """Pick a lane-dense (rows, width) factorization and a large row tile."""
    n128 = numel // LANE
    # Widest W <= MAX_LANE_MULT that divides n128 -> lane-dense, unmasked stores.
    w = 1
    for cand in range(min(MAX_LANE_MULT, n128), 0, -1):
        if n128 % cand == 0:
            w = cand
            break
    width = w * LANE
    rows = n128 // w

    # Dtype-aware minimum sublane tile: 8 for 4-byte, 16 for 2-byte, 32 for 1-byte.
    min_sub = max(8, 32 // itemsize)
    tile_rows = (TARGET_TILE_BYTES // (width * itemsize)) // min_sub * min_sub
    tile_rows = max(min_sub, tile_rows)
    if rows <= tile_rows:
        tile_rows = rows            # full-extent block along rows (always legal)
    return rows, width, tile_rows


def pallas_view(x, *shape):
    """Equivalent of View(*shape).forward(x) with the data copy done in Pallas."""
    numel = x.size
    target_shape = _resolve_shape(shape, numel)

    if numel == 0:
        # Degenerate empty tensor: view is pure metadata.
        return jnp.reshape(x, target_shape)

    itemsize = jnp.dtype(x.dtype).itemsize

    # NOTE: the metadata-only optimum is `return jnp.reshape(x, target_shape)`;
    # the Pallas copy below is the explicit-kernel interpretation of the module.
    flat = jnp.ravel(x)             # metadata-only for contiguous row-major input
    padded = numel
    if numel % LANE != 0:
        # TODO(synk): rare non-lane-aligned tail; pad <=127 elements (costs one
        # extra HBM pass — View targets in CNNs are lane-aligned in practice).
        padded = pl.cdiv(numel, LANE) * LANE
        flat = jnp.pad(flat, (0, padded - numel))

    rows, width, tile_rows = _slab_geometry(padded, itemsize)
    slab = flat.reshape(rows, width)

    grid = (pl.cdiv(rows, tile_rows),)
    out_slab = pl.pallas_call(
        _copy_kernel,
        out_shape=jax.ShapeDtypeStruct((rows, width), x.dtype),
        grid=grid,
        in_specs=[pl.BlockSpec((tile_rows, width), lambda i: (i, 0))],
        out_specs=pl.BlockSpec((tile_rows, width), lambda i: (i, 0)),
        compiler_params=pltpu.CompilerParams(
            dimension_semantics=("parallel",),
            vmem_limit_bytes=VMEM_LIMIT_BYTES,
        ),
        cost_estimate=pl.CostEstimate(
            flops=0,
            transcendentals=0,
            bytes_accessed=2 * padded * itemsize,
        ),
    )(slab)

    out_flat = out_slab.reshape(-1)
    if padded != numel:
        out_flat = out_flat[:numel]
    return out_flat.reshape(target_shape)


if __name__ == "__main__":
    key = jax.random.PRNGKey(0)
    # NCHW input, as produced upstream in MobileNet before View(-1, C*H*W).
    x = jax.random.normal(key, (2, 4, 16, 16), dtype=jnp.float32)

    # View(-1, 1024): flatten all trailing dims (the classic MobileNet use).
    y = pallas_view(x, -1, 4 * 16 * 16)
    y = jax.block_until_ready(y)

    # Check against pure-JAX reference (reshape == torch.view on contiguous data).
    ref = jnp.reshape(x, (-1, 4 * 16 * 16))
    assert y.shape == (2, 1024), y.shape
    assert y.dtype == x.dtype
    assert bool(jnp.array_equal(y, ref))

    print("KERNEL_OK")
</pallas_src>

<mosaic_0001>
module attributes {stable_mosaic.version = 11 : i64} {
  func.func @_copy_kernel(%arg0: i32, %arg1: memref<1x2048xf32, #tpu.memory_space<vmem>>, %arg2: memref<1x2048xf32, #tpu.memory_space<vmem>>) attributes {dimension_semantics = [#tpu.dimension_semantics<parallel>], iteration_bounds = array<i64: 1>, scalar_prefetch = 0 : i64, scratch_operands = 0 : i64, tpu.core_type = #tpu.core_type<tc>, window_params = [{transform_indices = @transform_0, window_bounds = array<i64: 1, 2048>}, {transform_indices = @transform_1, window_bounds = array<i64: 1, 2048>}]} {
    %c0 = arith.constant 0 : index
    %c0_0 = arith.constant 0 : index
    %0 = vector.load %arg1[%c0, %c0_0] : memref<1x2048xf32, #tpu.memory_space<vmem>>, vector<1x2048xf32>
    %c0_1 = arith.constant 0 : index
    %c0_2 = arith.constant 0 : index
    %1 = vector.load %arg2[%c0_1, %c0_2] : memref<1x2048xf32, #tpu.memory_space<vmem>>, vector<1x2048xf32>
    tpu.vector_store %arg2[%c0_1, %c0_2], %0 {strides = array<i32>} : memref<1x2048xf32, #tpu.memory_space<vmem>>, vector<1x2048xf32>,
    return
  }
  func.func @transform_0(%arg0: i32) -> (i32, i32) {
    %c0_i32 = arith.constant 0 : i32
    %c0_i32_0 = arith.constant 0 : i32
    return %arg0, %c0_i32 : i32, i32
  }
  func.func @transform_1(%arg0: i32) -> (i32, i32) {
    %c0_i32 = arith.constant 0 : i32
    %c0_i32_0 = arith.constant 0 : i32
    return %arg0, %c0_i32 : i32, i32
  }
}

</mosaic_0001>

<bundles_post_ra>
// kernel: tpu_custom_call.1
= control target key start
LH: loop header
LB: loop body
LE: loop exit
PB: predicated region body
PF: predicated region fallthrough
CT: control target
= control target key end

     0   :  { %6 = vsyncpa [#allocation3], 0  ;;  %s126_s0 = inlined_call_operand.hbm [shape: f32[1,2048], index: 0, kind: input, shape index: {}]   ;;  %s127_s1 = inlined_call_operand.hbm [shape: f32[1,2048], index: 1, kind: output, shape index: {}]  }
   0x1   :  { %7 = vsyncpa [#allocation4], 0  ;;  %s90_s6 = smov [#allocation2]   ;;  %s42_s10 = scalar_lea.hbm %s126_s0, 256 }
   0x2   :  { %s14_s7 = sshll.u32 %s90_s6, 4  ;;  %p43_p0 = scmp.ne.s32.totalorder %s126_s0, %s42_s10  ;;  %s15_s7 = int_to_ptr.vmem [resolvable:$true] %s14_s7 }
   0x3   :  { %p46_p1 = scmp.lt.u32.totalorder %s42_s10, %s126_s0 }
   0x5   :  { %p48_p2 = pnand %p46_p1, %p43_p0 }
   0x7   :  { %51 = shalt.err (!%p48_p2)
}
   0x8   :  { %s52_s15 = scalar_lea.vmem %s15_s7, 256  ;;  %p57_p4 = scmp.lt.s32.totalorder %s15_s7, %s15_s7 }
   0x9   :  { %p53_p3 = scmp.ne.s32.totalorder %s15_s7, %s52_s15  ;;  %p58_p5 = scmp.lt.s32.totalorder %s52_s15, %s52_s15 }
   0xb   :  { %p59_p6 = por %p58_p5, %p57_p4 }
   0xd   :  { %p60_p7 = pnand %p59_p6, %p53_p3 }
   0xf   :  { %63 = shalt.err (!%p60_p7)
}
  0x10   :  { %17 = dma.hbm_to_vmem [thread:$0]  %s126_s0, 256, %s15_s7, [#allocation3]  }
  0x11   :  { %86 = dma.done.wait [#allocation3], 256  }
  0x12   :  { %87 = vsyncadd [#allocation3], 4294967040  ;;  %s91_s18 = smov [#allocation5]   ;;  %v21_v0 = vld [vmem:[#allocation2] sm:$0xff]  ;;  %v22_v1 = vld [vmem:[#allocation2 + $0x8] sm:$0xff] }
  0x13   :  { %s31_s19 = sshll.u32 %s91_s18, 4  ;;  %23 = vst [vmem:[#allocation5] sm:$0xff] %v21_v0  ;;  %24 = vst [vmem:[#allocation5 + $0x8] sm:$0xff] %v22_v1  ;;  %s32_s19 = int_to_ptr.vmem [resolvable:$true] %s31_s19 }
  0x14   :  { %s64_s20 = scalar_lea.vmem %s32_s19, 256  ;;  %p69_p9 = scmp.lt.s32.totalorder %s32_s19, %s32_s19 }
  0x15   :  { %p65_p8 = scmp.ne.s32.totalorder %s32_s19, %s64_s20  ;;  %p70_p10 = scmp.lt.s32.totalorder %s64_s20, %s64_s20 }
  0x17   :  { %p71_p11 = por %p70_p10, %p69_p9 }
  0x19   :  { %p72_p12 = pnand %p71_p11, %p65_p8 }
  0x1b   :  { %75 = shalt.err (!%p72_p12)
}
  0x1c   :  { %s76_s0 = scalar_lea.hbm %s127_s1, 256 }
  0x1d   :  { %p77_p13 = scmp.ne.s32.totalorder %s127_s1, %s76_s0  ;;  %p80_p0 = scmp.lt.u32.totalorder %s76_s0, %s127_s1 }
  0x1f   :  { %p82_p1 = pnand %p80_p0, %p77_p13 }
  0x21   :  { %85 = shalt.err (!%p82_p1)
}
  0x22   :  { %34 = dma.vmem_to_hbm [thread:$0]  %s32_s19, 256, %s127_s1, [#allocation4]  }
  0x23   :  { %88 = dma.done.wait [#allocation4], 256  }
  0x24   :  { %89 = vsyncadd [#allocation4], 4294967040 }
  0x25   :  { %38 = vsyncpa [#allocation3], 1 }
  0x26   :  { %39 = vsyncpa [#allocation4], 1 }

</bundles_post_ra>
